<compile_context>
chip_gen: v7x
topology: tpu7x:2x2x1
jax: 0.10.0
libtpu: 0.0.40
codegen_flags: <defaults>
</compile_context>

<pallas_src>
import functools
import math

import jax
import jax.numpy as jnp
from jax import lax
from jax.experimental import pallas as pl
from jax.experimental.pallas import tpu as pltpu

GAMMA = 0.4
P_ORDER = 2  # NOTE: the algebraic collapse in the kernel assumes P_order == 2
_BASE = math.exp(-2.0 * GAMMA)


def _round_up(x, m):
    return ((x + m - 1) // m) * m


def _corr_loss_kernel(fs_i_ref, ft_i_ref, fs_j_ref, ft_j_ref,
                      loss_ref, acc_ref, *, scale):
    i = pl.program_id(0)
    j = pl.program_id(1)

    @pl.when(jnp.logical_and(i == 0, j == 0))
    def _init():
        acc_ref[...] = jnp.zeros_like(acc_ref)

    def normalize(ref):
        # F.normalize(x, p=2, dim=-1): x / max(||x||_2, 1e-12).
        # Clamping the sum of squares at 1e-24 is equivalent; rsqrt keeps this on
        # the EUP slot instead of a sqrt followed by a vector divide.
        x = ref[...]
        xf = x.astype(jnp.float32)
        sumsq = jnp.sum(xf * xf, axis=-1, keepdims=True)
        inv = lax.rsqrt(jnp.maximum(sumsq, 1e-24))
        return (xf * inv).astype(x.dtype)

    def gram(a, b):
        # Contract over the feature (lane) axis directly — no transpose of b.
        return lax.dot_general(
            a, b,
            dimension_numbers=(((1,), (1,)), ((), ())),
            preferred_element_type=jnp.float32,
        )

    sim_s = gram(normalize(fs_i_ref), normalize(fs_j_ref))
    sim_t = gram(normalize(ft_i_ref), normalize(ft_j_ref))

    # corr_s - corr_t == base*2*gamma*(sim_s - sim_t)*(1 + gamma*(sim_s + sim_t))
    # for P_order == 2; the constant (base*2*gamma)^2 / N^2 is folded into `scale`.
    d = (sim_s - sim_t) * (1.0 + GAMMA * (sim_s + sim_t))
    acc_ref[...] += jnp.sum(d * d, keepdims=True)

    @pl.when(jnp.logical_and(i == pl.num_programs(0) - 1,
                             j == pl.num_programs(1) - 1))
    def _finalize():
        loss_ref[...] = acc_ref[...] * scale


def correlation_loss(feat_s, feat_t, *, tile=256):
    assert feat_s.shape == feat_t.shape and feat_s.ndim == 2
    n, d = feat_s.shape

    # Row-tile size: multiple of 8 sublanes, capped at `tile` (256 => MXU-friendly
    # output tiles on v6e/v7x; pass tile=128 for v5e-sized tiles if desired).
    tm = min(tile, _round_up(n, 8))
    n_pad = _round_up(n, tm)
    if n_pad != n:
        # Zero-padded rows normalize to zero vectors, so their similarities are 0 in
        # BOTH matrices and the padded entries contribute exactly 0 to the loss sum.
        pad = ((0, n_pad - n), (0, 0))
        feat_s = jnp.pad(feat_s, pad)
        feat_t = jnp.pad(feat_t, pad)

    grid_n = n_pad // tm
    scale = (_BASE * 2.0 * GAMMA) ** 2 / float(n * n)

    row_spec_i = pl.BlockSpec((tm, d), lambda i, j: (i, 0))
    row_spec_j = pl.BlockSpec((tm, d), lambda i, j: (j, 0))

    itemsize = jnp.dtype(feat_s.dtype).itemsize
    cost = pl.CostEstimate(
        flops=4 * n_pad * n_pad * d,                 # two Gram matmuls (2*N*N*D each)
        transcendentals=4 * n_pad * grid_n,          # rsqrt per row per tile visit
        bytes_accessed=4 * tm * d * itemsize * grid_n * grid_n + 4,
    )

    out = pl.pallas_call(
        functools.partial(_corr_loss_kernel, scale=scale),
        out_shape=jax.ShapeDtypeStruct((1, 1), jnp.float32),
        grid_spec=pltpu.PrefetchScalarGridSpec(
            num_scalar_prefetch=0,
            grid=(grid_n, grid_n),
            in_specs=[row_spec_i, row_spec_i, row_spec_j, row_spec_j],
            out_specs=pl.BlockSpec((1, 1), lambda i, j: (0, 0)),
            scratch_shapes=[pltpu.VMEM((1, 1), jnp.float32)],
        ),
        compiler_params=pltpu.CompilerParams(
            # Both grid axes feed the single resident accumulator -> "arbitrary".
            dimension_semantics=("arbitrary", "arbitrary"),
        ),
        cost_estimate=cost,
    )(feat_s, feat_t, feat_s, feat_t)
    return out[0, 0]


def _reference(feat_s, feat_t):
    def corr(feat):
        feat = feat / jnp.maximum(
            jnp.linalg.norm(feat, axis=-1, keepdims=True), 1e-12
        )
        sim = feat @ feat.T
        out = jnp.zeros_like(sim)
        for p in range(P_ORDER + 1):
            out = out + _BASE * (2 * GAMMA) ** p / math.factorial(p) * sim ** p
        return out

    diff = corr(feat_s) - corr(feat_t)
    return jnp.mean(diff * diff)


if __name__ == "__main__":
    key = jax.random.PRNGKey(0)
    k1, k2, k3, k4 = jax.random.split(key, 4)

    # Case 1: single-tile path (batch of 8 feature vectors, hidden dim 32).
    N, D = 8, 32
    feat_s = jax.random.normal(k1, (N, D), dtype=jnp.float32)
    feat_t = jax.random.normal(k2, (N, D), dtype=jnp.float32)
    loss = correlation_loss(feat_s, feat_t)
    jax.block_until_ready(loss)
    ref = _reference(feat_s, feat_t)
    assert jnp.allclose(loss, ref, atol=1e-5, rtol=1e-5), (loss, ref)

    # Case 2: exercises the tiled grid + zero-row padding (N=20 -> 24, 3x3 grid).
    N2, D2 = 20, 32
    feat_s2 = jax.random.normal(k3, (N2, D2), dtype=jnp.float32)
    feat_t2 = jax.random.normal(k4, (N2, D2), dtype=jnp.float32)
    loss2 = correlation_loss(feat_s2, feat_t2, tile=8)
    jax.block_until_ready(loss2)
    ref2 = _reference(feat_s2, feat_t2)
    assert jnp.allclose(loss2, ref2, atol=1e-5, rtol=1e-5), (loss2, ref2)

    print("KERNEL_OK")
</pallas_src>

<mosaic_0001>
module attributes {stable_mosaic.version = 11 : i64} {
  func.func @_corr_loss_kernel(%arg0: i32, %arg1: i32, %arg2: memref<8x32xf32, #tpu.memory_space<vmem>>, %arg3: memref<8x32xf32, #tpu.memory_space<vmem>>, %arg4: memref<8x32xf32, #tpu.memory_space<vmem>>, %arg5: memref<8x32xf32, #tpu.memory_space<vmem>>, %arg6: memref<1x1xf32, #tpu.memory_space<vmem>>, %arg7: memref<1x1xf32, #tpu.memory_space<vmem>>) attributes {dimension_semantics = [#tpu.dimension_semantics<arbitrary>, #tpu.dimension_semantics<arbitrary>], iteration_bounds = array<i64: 1, 1>, scalar_prefetch = 0 : i64, scratch_operands = 1 : i64, tpu.core_type = #tpu.core_type<tc>, window_params = [{transform_indices = @transform_0, window_bounds = array<i64: 8, 32>}, {transform_indices = @transform_1, window_bounds = array<i64: 8, 32>}, {transform_indices = @transform_2, window_bounds = array<i64: 8, 32>}, {transform_indices = @transform_3, window_bounds = array<i64: 8, 32>}, {pipeline_mode = #tpu.pipeline_mode<synchronous>, transform_indices = @transform_4, window_bounds = array<i64: 1, 1>}]} {
    %c0_i32 = arith.constant 0 : i32
    %0 = arith.cmpi eq, %arg0, %c0_i32 : i32
    %c0_i32_0 = arith.constant 0 : i32
    %1 = arith.cmpi eq, %arg1, %c0_i32_0 : i32
    %2 = arith.andi %0, %1 : i1
    %3 = arith.extui %2 : i1 to i32
    %c0_i32_1 = arith.constant 0 : i32
    %4 = arith.cmpi ne, %3, %c0_i32_1 : i32
    scf.if %4 {
      %cst_28 = arith.constant 0.000000e+00 : f32
      %64 = vector.broadcast %cst_28 : f32 to vector<1x1xf32>
      %c0_29 = arith.constant 0 : index
      %c0_30 = arith.constant 0 : index
      %65 = vector.load %arg7[%c0_29, %c0_30] : memref<1x1xf32, #tpu.memory_space<vmem>>, vector<1x1xf32>
      tpu.vector_store %arg7[%c0_29, %c0_30], %64 {strides = array<i32>} : memref<1x1xf32, #tpu.memory_space<vmem>>, vector<1x1xf32>,
    } else {
    }
    %c0 = arith.constant 0 : index
    %c0_2 = arith.constant 0 : index
    %5 = vector.load %arg2[%c0, %c0_2] : memref<8x32xf32, #tpu.memory_space<vmem>>, vector<8x32xf32>
    %6 = arith.mulf %5, %5 : vector<8x32xf32>
    %cst = arith.constant dense<0.000000e+00> : vector<8xf32>
    %7 = vector.multi_reduction <add>, %6, %cst [1] : vector<8x32xf32> to vector<8xf32>
    %8 = vector.shape_cast %7 : vector<8xf32> to vector<8x1xf32>
    %cst_3 = arith.constant 1.000000e-24 : f32
    %9 = vector.broadcast %cst_3 : f32 to vector<8x1xf32>
    %10 = arith.maximumf %8, %9 : vector<8x1xf32>
    %11 = math.rsqrt %10 : vector<8x1xf32>
    %12 = vector.broadcast %11 : vector<8x1xf32> to vector<8x32xf32>
    %13 = arith.mulf %5, %12 : vector<8x32xf32>
    %c0_4 = arith.constant 0 : index
    %c0_5 = arith.constant 0 : index
    %14 = vector.load %arg4[%c0_4, %c0_5] : memref<8x32xf32, #tpu.memory_space<vmem>>, vector<8x32xf32>
    %15 = arith.mulf %14, %14 : vector<8x32xf32>
    %cst_6 = arith.constant dense<0.000000e+00> : vector<8xf32>
    %16 = vector.multi_reduction <add>, %15, %cst_6 [1] : vector<8x32xf32> to vector<8xf32>
    %17 = vector.shape_cast %16 : vector<8xf32> to vector<8x1xf32>
    %cst_7 = arith.constant 1.000000e-24 : f32
    %18 = vector.broadcast %cst_7 : f32 to vector<8x1xf32>
    %19 = arith.maximumf %17, %18 : vector<8x1xf32>
    %20 = math.rsqrt %19 : vector<8x1xf32>
    %21 = vector.broadcast %20 : vector<8x1xf32> to vector<8x32xf32>
    %22 = arith.mulf %14, %21 : vector<8x32xf32>
    %cst_8 = arith.constant dense<0.000000e+00> : vector<8x8xf32>
    %23 = tpu.matmul %13, %22, %cst_8 {dimension_numbers = #tpu.dot_dimension_numbers<[1], [1], [0], [0], [0, 0, 1, 0], [], []>} : vector<8x32xf32>, vector<8x32xf32>, vector<8x8xf32> -> vector<8x8xf32>
    %c0_9 = arith.constant 0 : index
    %c0_10 = arith.constant 0 : index
    %24 = vector.load %arg3[%c0_9, %c0_10] : memref<8x32xf32, #tpu.memory_space<vmem>>, vector<8x32xf32>
    %25 = arith.mulf %24, %24 : vector<8x32xf32>
    %cst_11 = arith.constant dense<0.000000e+00> : vector<8xf32>
    %26 = vector.multi_reduction <add>, %25, %cst_11 [1] : vector<8x32xf32> to vector<8xf32>
    %27 = vector.shape_cast %26 : vector<8xf32> to vector<8x1xf32>
    %cst_12 = arith.constant 1.000000e-24 : f32
    %28 = vector.broadcast %cst_12 : f32 to vector<8x1xf32>
    %29 = arith.maximumf %27, %28 : vector<8x1xf32>
    %30 = math.rsqrt %29 : vector<8x1xf32>
    %31 = vector.broadcast %30 : vector<8x1xf32> to vector<8x32xf32>
    %32 = arith.mulf %24, %31 : vector<8x32xf32>
    %c0_13 = arith.constant 0 : index
    %c0_14 = arith.constant 0 : index
    %33 = vector.load %arg5[%c0_13, %c0_14] : memref<8x32xf32, #tpu.memory_space<vmem>>, vector<8x32xf32>
    %34 = arith.mulf %33, %33 : vector<8x32xf32>
    %cst_15 = arith.constant dense<0.000000e+00> : vector<8xf32>
    %35 = vector.multi_reduction <add>, %34, %cst_15 [1] : vector<8x32xf32> to vector<8xf32>
    %36 = vector.shape_cast %35 : vector<8xf32> to vector<8x1xf32>
    %cst_16 = arith.constant 1.000000e-24 : f32
    %37 = vector.broadcast %cst_16 : f32 to vector<8x1xf32>
    %38 = arith.maximumf %36, %37 : vector<8x1xf32>
    %39 = math.rsqrt %38 : vector<8x1xf32>
    %40 = vector.broadcast %39 : vector<8x1xf32> to vector<8x32xf32>
    %41 = arith.mulf %33, %40 : vector<8x32xf32>
    %cst_17 = arith.constant dense<0.000000e+00> : vector<8x8xf32>
    %42 = tpu.matmul %32, %41, %cst_17 {dimension_numbers = #tpu.dot_dimension_numbers<[1], [1], [0], [0], [0, 0, 1, 0], [], []>} : vector<8x32xf32>, vector<8x32xf32>, vector<8x8xf32> -> vector<8x8xf32>
    %43 = arith.subf %23, %42 : vector<8x8xf32>
    %44 = arith.addf %23, %42 : vector<8x8xf32>
    %cst_18 = arith.constant 4.000000e-01 : f32
    %45 = vector.broadcast %cst_18 : f32 to vector<8x8xf32>
    %46 = arith.mulf %45, %44 : vector<8x8xf32>
    %cst_19 = arith.constant 1.000000e+00 : f32
    %47 = vector.broadcast %cst_19 : f32 to vector<8x8xf32>
    %48 = arith.addf %47, %46 : vector<8x8xf32>
    %49 = arith.mulf %43, %48 : vector<8x8xf32>
    %c0_20 = arith.constant 0 : index
    %c0_21 = arith.constant 0 : index
    %50 = vector.load %arg7[%c0_20, %c0_21] : memref<1x1xf32, #tpu.memory_space<vmem>>, vector<1x1xf32>
    %51 = arith.mulf %49, %49 : vector<8x8xf32>
    %52 = vector.shape_cast %51 : vector<8x8xf32> to vector<1x8x8xf32>
    %cst_22 = arith.constant dense<0.000000e+00> : vector<1xf32>
    %53 = vector.multi_reduction <add>, %52, %cst_22 [1, 2] : vector<1x8x8xf32> to vector<1xf32>
    %54 = vector.shape_cast %53 : vector<1xf32> to vector<1x1x1xf32>
    %55 = vector.extract %54[0, 0, 0] : f32 from vector<1x1x1xf32>
    %56 = vector.broadcast %55 : f32 to vector<1x1xf32>
    %57 = arith.addf %50, %56 : vector<1x1xf32>
    %c0_23 = arith.constant 0 : index
    %c0_24 = arith.constant 0 : index
    %58 = vector.load %arg7[%c0_23, %c0_24] : memref<1x1xf32, #tpu.memory_space<vmem>>, vector<1x1xf32>
    tpu.vector_store %arg7[%c0_23, %c0_24], %57 {strides = array<i32>} : memref<1x1xf32, #tpu.memory_space<vmem>>, vector<1x1xf32>,
    %c0_i32_25 = arith.constant 0 : i32
    %59 = arith.cmpi eq, %arg0, %c0_i32_25 : i32
    %c0_i32_26 = arith.constant 0 : i32
    %60 = arith.cmpi eq, %arg1, %c0_i32_26 : i32
    %61 = arith.andi %59, %60 : i1
    %62 = arith.extui %61 : i1 to i32
    %c0_i32_27 = arith.constant 0 : i32
    %63 = arith.cmpi ne, %62, %c0_i32_27 : i32
    scf.if %63 {
      %c0_28 = arith.constant 0 : index
      %c0_29 = arith.constant 0 : index
      %64 = vector.load %arg7[%c0_28, %c0_29] : memref<1x1xf32, #tpu.memory_space<vmem>>, vector<1x1xf32>
      %cst_30 = arith.constant 0.00201896508 : f32
      %65 = vector.broadcast %cst_30 : f32 to vector<1x1xf32>
      %66 = arith.mulf %64, %65 : vector<1x1xf32>
      %c0_31 = arith.constant 0 : index
      %c0_32 = arith.constant 0 : index
      %67 = vector.load %arg6[%c0_31, %c0_32] : memref<1x1xf32, #tpu.memory_space<vmem>>, vector<1x1xf32>
      tpu.vector_store %arg6[%c0_31, %c0_32], %66 {strides = array<i32>} : memref<1x1xf32, #tpu.memory_space<vmem>>, vector<1x1xf32>,
    } else {
    }
    return
  }
  func.func @transform_0(%arg0: i32, %arg1: i32) -> (i32, i32) {
    %c0_i32 = arith.constant 0 : i32
    %c0_i32_0 = arith.constant 0 : i32
    return %arg0, %c0_i32 : i32, i32
  }
  func.func @transform_1(%arg0: i32, %arg1: i32) -> (i32, i32) {
    %c0_i32 = arith.constant 0 : i32
    %c0_i32_0 = arith.constant 0 : i32
    return %arg0, %c0_i32 : i32, i32
  }
  func.func @transform_2(%arg0: i32, %arg1: i32) -> (i32, i32) {
    %c0_i32 = arith.constant 0 : i32
    %c0_i32_0 = arith.constant 0 : i32
    return %arg1, %c0_i32 : i32, i32
  }
  func.func @transform_3(%arg0: i32, %arg1: i32) -> (i32, i32) {
    %c0_i32 = arith.constant 0 : i32
    %c0_i32_0 = arith.constant 0 : i32
    return %arg1, %c0_i32 : i32, i32
  }
  func.func @transform_4(%arg0: i32, %arg1: i32) -> (i32, i32) {
    %c0_i32 = arith.constant 0 : i32
    %c0_i32_0 = arith.constant 0 : i32
    %c0_i32_1 = arith.constant 0 : i32
    return %c0_i32, %c0_i32_0 : i32, i32
  }
}

</mosaic_0001>

<bundles_post_ra>
// kernel: tpu_custom_call.1
= control target key start
LH: loop header
LB: loop body
LE: loop exit
PB: predicated region body
PF: predicated region fallthrough
CT: control target
= control target key end

     0   :  { %9 = vsyncpa [#allocation4], 0  ;;  %s510_s0 = inlined_call_operand.hbm [shape: f32[8,32], index: 0, kind: input, shape index: {}]   ;;  %s511_s1 = inlined_call_operand.hbm [shape: f32[8,32], index: 1, kind: input, shape index: {}]   ;;  %s512_s2 = inlined_call_operand.hbm [shape: f32[8,32], index: 2, kind: input, shape index: {}]   ;;  %s513_s3 = inlined_call_operand.vmem [shape: f32[8,32], index: 3, kind: input, shape index: {}]   ;;  %s514_s4 = inlined_call_operand.hbm [shape: f32[1,1], index: 4, kind: output, shape index: {}]  }
   0x1   :  { %10 = vsyncpa [#allocation7], 0 }
   0x2   :  { %11 = vsyncpa [#allocation5], 0  ;;  %s417_s15 = smov [#allocation6]   ;;  %s418_s17 = smov [#allocation3]  }
   0x3   :  { %s28_s16 = sshll.u32 %s417_s15, 4  ;;  %s18_s18 = sshll.u32 %s418_s17, 4  ;;  %s29_s16 = int_to_ptr.vmem [resolvable:$true] %s28_s16  ;;  %s19_s18 = int_to_ptr.vmem [resolvable:$true] %s18_s18 }
   0x4   :  { %s323_s21 = scalar_lea.hbm %s511_s1, 128 }
   0x5   :  { %p324_p0 = scmp.ne.s32.totalorder %s511_s1, %s323_s21  ;;  %p327_p1 = scmp.lt.u32.totalorder %s323_s21, %s511_s1 }
   0x7   :  { %p329_p2 = pnand %p327_p1, %p324_p0 }
   0x9   :  { %332 = shalt.err (!%p329_p2)
}
   0xa   :  { %s333_s26 = scalar_lea.vmem %s29_s16, 128  ;;  %p338_p4 = scmp.lt.s32.totalorder %s29_s16, %s29_s16 }
   0xb   :  { %p334_p3 = scmp.ne.s32.totalorder %s29_s16, %s333_s26  ;;  %p339_p5 = scmp.lt.s32.totalorder %s333_s26, %s333_s26 }
   0xd   :  { %p340_p6 = por %p339_p5, %p338_p4 }
   0xf   :  { %p341_p7 = pnand %p340_p6, %p334_p3 }
  0x11   :  { %344 = shalt.err (!%p341_p7)
}
  0x12   :  { %31 = dma.hbm_to_vmem [thread:$0]  %s511_s1, 128, %s29_s16, [#allocation7]  }
  0x13   :  { %s345_s5 = scalar_lea.hbm %s510_s0, 128 }
  0x14   :  { %p346_p8 = scmp.ne.s32.totalorder %s510_s0, %s345_s5  ;;  %p349_p9 = scmp.lt.u32.totalorder %s345_s5, %s510_s0 }
  0x16   :  { %p351_p10 = pnand %p349_p9, %p346_p8 }
  0x18   :  { %354 = shalt.err (!%p351_p10)
}
  0x19   :  { %s355_s10 = scalar_lea.vmem %s19_s18, 128  ;;  %p360_p12 = scmp.lt.s32.totalorder %s19_s18, %s19_s18 }
  0x1a   :  { %p356_p11 = scmp.ne.s32.totalorder %s19_s18, %s355_s10  ;;  %p361_p13 = scmp.lt.s32.totalorder %s355_s10, %s355_s10 }
  0x1c   :  { %p362_p0 = por %p361_p13, %p360_p12 }
  0x1e   :  { %p363_p1 = pnand %p362_p0, %p356_p11 }
  0x20   :  { %366 = shalt.err (!%p363_p1)
}
  0x21   :  { %21 = dma.hbm_to_vmem [thread:$0]  %s510_s0, 128, %s19_s18, [#allocation4]  }
  0x22   :  { %s419_s12 = smov [#allocation8]   ;;  %s367_s16 = scalar_lea.hbm %s512_s2, 128 }
  0x23   :  { %s38_s13 = sshll.u32 %s419_s12, 4  ;;  %p368_p2 = scmp.ne.s32.totalorder %s512_s2, %s367_s16  ;;  %s39_s13 = int_to_ptr.vmem [resolvable:$true] %s38_s13 }
  0x24   :  { %p371_p3 = scmp.lt.u32.totalorder %s367_s16, %s512_s2 }
  0x26   :  { %p373_p4 = pnand %p371_p3, %p368_p2 }
  0x28   :  { %376 = shalt.err (!%p373_p4)
}
  0x29   :  { %s377_s22 = scalar_lea.vmem %s39_s13, 128  ;;  %p382_p6 = scmp.lt.s32.totalorder %s39_s13, %s39_s13 }
  0x2a   :  { %p378_p5 = scmp.ne.s32.totalorder %s39_s13, %s377_s22  ;;  %p383_p7 = scmp.lt.s32.totalorder %s377_s22, %s377_s22 }
  0x2c   :  { %p384_p8 = por %p383_p7, %p382_p6 }
  0x2e   :  { %p385_p9 = pnand %p384_p8, %p378_p5 }
  0x30   :  { %388 = shalt.err (!%p385_p9)
}
  0x31   :  { %41 = dma.hbm_to_vmem [thread:$0]  %s512_s2, 128, %s39_s13, [#allocation7]  }
  0x32   :  { %411 = dma.done.wait [#allocation4], 128  }
  0x33   :  { %412 = vsyncadd [#allocation4], 4294967168 }
  0x34   :  { %413 = dma.done.wait [#allocation7], 256  }
  0x35   :  { %414 = vsyncadd [#allocation7], 4294967040  ;;  %vm63_vm0 = vcmask 261120   ;;  %v70_v0 = vld [vmem:[#allocation8] sm:$0xff]  ;;  %v61_v1 = vld [vmem:[#allocation3] sm:$0xff]  ;;  %v420_v12 = vmov 0.0  }
  0x36   :  { %v162_v2 = vld [vmem:[%s513_s3] sm:$0xff]  ;;  %v71_v3 = vmul.f32 %v70_v0, %v70_v0  ;;  %v62_v4 = vmul.f32 %v61_v1, %v61_v1  ;;  %v154_v6 = vld [vmem:[#allocation6] sm:$0xff]  ;;  %297 = vmatprep.subr.mxu0 %v420_v12  ;;  %302 = vmatprep.subr.mxu1 %v420_v12  ;;  %vm421_vm1 = vmmov 0   ;;  %vm253_vm2 = vcmask 64512   ;;  %s422_s3 = smov [#allocation9]  }
  0x37   :  { %v163_v5 = vmul.f32 %v162_v2, %v162_v2  ;;  %v155_v7 = vmul.f32 %v154_v6, %v154_v6  ;;  %299 = vmatprep.mubr.msk.f32.mxu0 %vm421_vm1, %v420_v12  ;;  %304 = vmatprep.mubr.msk.f32.mxu1 %vm421_vm1, %v420_v12  ;;  %vm59_vm3 = vcmask 0   ;;  %s279_s25 = sshll.u32 %s422_s3, 4  ;;  %s280_s25 = int_to_ptr.vmem [resolvable:$true] %s279_s25 }
  0x38   :  { %v72_v8 = vsel %vm63_vm0, %v71_v3, 0.0  ;;  %v64_v9 = vsel %vm63_vm0, %v62_v4, 0.0  ;;  %60 = vst.msk [vmem:[#allocation2] sm:$0x1] %vm59_vm3, %v420_v12  ;;  %s389_s26 = scalar_lea.vmem %s280_s25, 16  ;;  %s393_s27 = scalar_lea.vmem %s280_s25, 32 }
  0x39   :  { %73 = vadd.xlane.f32.xlu0 %v72_v8  ;;  %65 = vadd.xlane.f32.xlu1 %v64_v9  ;;  %v164_v10 = vsel %vm63_vm0, %v163_v5, 0.0  ;;  %v156_v11 = vsel %vm63_vm0, %v155_v7, 0.0  ;;  %p390_p10 = scmp.ne.s32.totalorder %s280_s25, %s389_s26  ;;  %p394_p11 = scmp.lt.s32.totalorder %s280_s25, %s280_s25 }
  0x3a   :  { %p395_p12 = scmp.lt.s32.totalorder %s393_s27, %s389_s26 }
  0x3c   :  { %p396_p13 = por %p395_p12, %p394_p11 }
  0x3d   :  { %165 = vadd.xlane.f32.xlu0 %v164_v10  ;;  %157 = vadd.xlane.f32.xlu1 %v156_v11 }
  0x3e   :  { %p397_p0 = pnand %p396_p13, %p390_p10 }
  0x3f   :  { %v251_v47 = vld [vmem:[#allocation2] sm:$0x1] }
  0xc6   :  { %v74_v13 = vpop.xlane.xlu0 %73  ;;  %v66_v14 = vpop.xlane.xlu1 %65 }
  0xc7   :  { %v75_v15 = vmax.f32 %v74_v13, 1e-24  ;;  %v67_v16 = vmax.f32 %v66_v14, 1e-24 }
  0xc9   :  { %315 = vrsqrt.f32 %v75_v15 }
  0xca   :  { %317 = vrsqrt.f32 %v67_v16  ;;  %v166_v17 = vpop.xlane.xlu0 %165  ;;  %v158_v18 = vpop.xlane.xlu1 %157 }
  0xcb   :  { %v167_v19 = vmax.f32 %v166_v17, 1e-24  ;;  %v159_v20 = vmax.f32 %v158_v18, 1e-24 }
  0xcd   :  { %319 = vrsqrt.f32 %v167_v19 }
  0xce   :  { %321 = vrsqrt.f32 %v159_v20 }
  0xd3   :  { %v316_v21 = vpop.eup %315 }
  0xd4   :  { %v318_v22 = vpop.eup %317  ;;  %v77_v23 = vmul.f32 %v316_v21, %v70_v0 }
  0xd5   :  { %v69_v24 = vmul.f32 %v318_v22, %v61_v1 }
  0xd6   :  { %298 = vmatpush3.xpose.msk.msra.mxu0 %vm63_vm0, %v77_v23 }
  0xd7   :  { %v320_v25 = vpop.eup %319 }
  0xd8   :  { %v322_v26 = vpop.eup %321  ;;  %v169_v27 = vmul.f32 %v320_v25, %v162_v2 }
  0xd9   :  { %300 = vmatmul.mubr.msk.f32.vlgmr.msra.gmra.mrb[0].mxu0 %vm63_vm0, %v69_v24  ;;  %v161_v28 = vmul.f32 %v322_v26, %v154_v6 }
  0xda   :  { %303 = vmatpush3.xpose.msk.msra.mxu1 %vm63_vm0, %v169_v27 }
  0xdd   :  { %305 = vmatmul.mubr.msk.f32.vlgmr.msra.gmra.mrb[0].mxu1 %vm63_vm0, %v161_v28 }
 0x1ac   :  { %v150_v29 = vpop.f32.mrb[0].mxu0 }
 0x1ad   :  { %v301_v30 = vpop.f32.mrb[1].mxu0 }
 0x1b0   :  { %v242_v31 = vpop.f32.mrb[0].mxu1 }
 0x1b1   :  { %v246_v32 = vsub.f32 %v150_v29, %v242_v31  ;;  %v247_v33 = vadd.f32 %v242_v31, %v150_v29  ;;  %v306_v34 = vpop.f32.mrb[1].mxu1 }
 0x1b3   :  { %v248_v35 = vmul.f32 0.4, %v247_v33 }
 0x1b5   :  { %v249_v36 = vadd.f32 1.0, %v248_v35 }
 0x1b7   :  { %v250_v37 = vmul.f32 %v249_v36, %v246_v32 }
 0x1b9   :  { %v252_v38 = vmul.f32 %v250_v37, %v250_v37 }
 0x1bb   :  { %v254_v39 = vsel %vm253_vm2, %v252_v38, 0.0 }
 0x1bc   :  { %255 = vadd.xlane.f32.xlu0 %v254_v39 }
 0x249   :  { %v256_v40 = vpop.xlane.xlu0 %255 }
 0x24a   :  { %v257_v41 = vrot.slane %v256_v40, 4 }
 0x24c   :  { %v258_v42 = vadd.f32 %v257_v41, %v256_v40 }
 0x24e   :  { %v259_v43 = vrot.slane %v258_v42, 2 }
 0x250   :  { %v260_v44 = vadd.f32 %v259_v43, %v258_v42 }
 0x252   :  { %v261_v45 = vrot.slane %v260_v44, 1 }
 0x254   :  { %v262_v46 = vadd.f32 %v261_v45, %v260_v44 }
 0x256   :  { %307 = vpush %v262_v46 }
 0x287   :  { %s308_s2 = spop %307 }
 0x288   :  { %v264_v48 = vstv %s308_s2 }
 0x289   :  { %v265_v49 = vadd.f32 %v264_v48, %v251_v47 }
 0x28b   :  { %267 = vst.msk [vmem:[#allocation2] sm:$0x1] %vm59_vm3, %v265_v49 }
 0x292   :  { %v270_v50 = vld [vmem:[#allocation2] sm:$0x1] }
 0x293   :  { %v271_v51 = vmul.f32 0.002018965, %v270_v50 }
 0x295   :  { %272 = vst.msk [vmem:[#allocation9] sm:$0x1] %vm59_vm3, %v271_v51 }
 0x296   :  { %400 = shalt.err (!%p397_p0)
}
 0x297   :  { %s401_s30 = scalar_lea.hbm %s514_s4, 16 }
 0x298   :  { %p402_p1 = scmp.ne.s32.totalorder %s514_s4, %s401_s30  ;;  %p405_p2 = scmp.lt.u32.totalorder %s401_s30, %s514_s4 }
 0x29a   :  { %p407_p3 = pnand %p405_p2, %p402_p1 }
 0x29c   :  { %410 = shalt.err (!%p407_p3)
}
 0x29d   :  { %282 = dma.vmem_to_hbm [thread:$0]  %s280_s25, 16, %s514_s4, [#allocation5]  }
 0x29e   :  { %415 = dma.done.wait [#allocation5], 16  }
 0x29f   :  { %416 = vsyncadd [#allocation5], 4294967280 }
 0x2a0   :  { %286 = vsyncpa [#allocation4], 1 }
 0x2a1   :  { %287 = vsyncpa [#allocation7], 1 }
 0x2a2   :  { %288 = vsyncpa [#allocation5], 1 }

</bundles_post_ra>
